<compile_context>
chip_gen: v7x
topology: tpu7x:2x2x1
jax: 0.10.0
libtpu: 0.0.40
codegen_flags: <defaults>
</compile_context>

<pallas_src>
import functools

import jax
import jax.numpy as jnp
from jax.experimental import pallas as pl
from jax.experimental.pallas import tpu as pltpu

NEG_SLOPE = 0.3
K_TAPS = 9   # conv4 kernel height
PAD = 4      # conv4 padding along height


def _round_up(a, b):
    return ((a + b - 1) // b) * b


def _fused_block_kernel(x_ref, w_ref, shift_ref, o_ref):
    """One TILE_M-row slab per grid step.

    x_ref     : (TILE_M, Kw_pad)   bf16 im2col rows (conv3+conv4 receptive field, zero padded)
    w_ref     : (Kw_pad, C_out)    bf16 fused weight (conv3 @ conv4, BN scale folded in)
    shift_ref : (1, C_out)         f32 BN shift  (beta - mean * scale)
    o_ref     : (TILE_M, C_out)    f32 output rows
    """
    acc = jnp.dot(x_ref[...], w_ref[...], preferred_element_type=jnp.float32)
    y = acc + shift_ref[...]
    # LeakyReLU(0.3) in f32.
    y = jnp.where(y > 0, y, NEG_SLOPE * y)
    # TODO(synk): Dropout(0.5) is identity in eval mode; training-mode stochastic
    # masking is intentionally not implemented here.
    o_ref[...] = y.astype(o_ref.dtype)


@functools.partial(jax.jit, static_argnames=("channels_last",))
def second_conv_block(x_nchw, w3, w4, gamma, beta, run_mean, run_var,
                      eps=1e-5, channels_last=False):
    """x_nchw: (N, C_in, H, W) float32.

    Returns NCHW (N, C_out, H, 1) by default (matches PyTorch), or channels-last
    (N, H, C_out) if channels_last=True (skips the final transpose round-trip).
    """
    N, C_in, H, W = x_nchw.shape
    C_out = w3.shape[0]
    assert w3.shape == (C_out, C_in, 1, W)
    assert w4.shape == (C_out, C_out, K_TAPS, 1)

    # ---- input repack: (N, C_in, H, W) -> (N, H, C_in*W), pad time axis, im2col ----
    x_r = jnp.transpose(x_nchw, (0, 2, 1, 3)).reshape(N, H, C_in * W)
    x_pad = jnp.pad(x_r, ((0, 0), (PAD, PAD), (0, 0)))
    # (N, H, K, C_in*W): row h gathers the 9 time-shifted conv3 input rows.
    x_col = jnp.stack([x_pad[:, k:k + H, :] for k in range(K_TAPS)], axis=2)
    x_col = x_col.reshape(N * H, K_TAPS * C_in * W).astype(jnp.bfloat16)

    # ---- fuse conv3 + conv4 + BN scale into one weight ----
    w3_flat = jnp.transpose(w3[:, :, 0, :].reshape(C_out, C_in * W))      # (CinW, C_out)
    w4_k = jnp.transpose(w4[:, :, :, 0], (2, 1, 0))                       # (K, C_out, C_out)
    scale = gamma / jnp.sqrt(run_var + eps)                               # (C_out,)
    shift = (beta - run_mean * scale).reshape(1, C_out).astype(jnp.float32)
    wf = jnp.einsum("ic,kcd->kid", w3_flat, w4_k)                         # (K, CinW, C_out)
    wf = (wf * scale[None, None, :]).reshape(K_TAPS * C_in * W, C_out)
    wf = wf.astype(jnp.bfloat16)

    # ---- pad contraction dim to a lane-dense multiple of 128 ----
    M = N * H
    Kw = K_TAPS * C_in * W
    Kw_pad = _round_up(Kw, 128)
    if Kw_pad != Kw:
        x_col = jnp.pad(x_col, ((0, 0), (0, Kw_pad - Kw)))
        wf = jnp.pad(wf, ((0, Kw_pad - Kw), (0, 0)))

    # ---- tile the N*H row slab ----
    TILE_M = min(256, _round_up(M, 16))
    M_pad = _round_up(M, TILE_M)
    if M_pad != M:
        x_col = jnp.pad(x_col, ((0, M_pad - M), (0, 0)))

    out_flat = pl.pallas_call(
        _fused_block_kernel,
        out_shape=jax.ShapeDtypeStruct((M_pad, C_out), jnp.float32),
        grid_spec=pltpu.PrefetchScalarGridSpec(
            num_scalar_prefetch=0,
            grid=(M_pad // TILE_M,),
            in_specs=[
                pl.BlockSpec((TILE_M, Kw_pad), lambda m: (m, 0)),
                pl.BlockSpec((Kw_pad, C_out), lambda m: (0, 0)),
                pl.BlockSpec((1, C_out), lambda m: (0, 0)),
            ],
            out_specs=pl.BlockSpec((TILE_M, C_out), lambda m: (m, 0)),
        ),
        compiler_params=pltpu.CompilerParams(
            dimension_semantics=("parallel",)),
    )(x_col, wf, shift)

    out_nhc = out_flat[:M].reshape(N, H, C_out)
    if channels_last:
        return out_nhc
    # (N, H, C_out) -> NCHW (N, C_out, H, 1) to match PyTorch exactly.
    return jnp.transpose(out_nhc, (0, 2, 1))[:, :, :, None]


def _reference(x_nchw, w3, w4, gamma, beta, run_mean, run_var, eps=1e-5):
    """Pure-JAX f32 reference of the same eval-mode forward pass."""
    y3 = jnp.einsum("nchw,ocw->noh", x_nchw, w3[:, :, 0, :])          # conv3: (N, C_out, H)
    y3p = jnp.pad(y3, ((0, 0), (0, 0), (PAD, PAD)))
    H = x_nchw.shape[2]
    y4 = jnp.zeros_like(y3)
    for k in range(K_TAPS):                                           # conv4 (cross-correlation)
        y4 = y4 + jnp.einsum("nch,oc->noh", y3p[:, :, k:k + H], w4[:, :, k, 0])
    scale = gamma / jnp.sqrt(run_var + eps)
    y = y4 * scale[None, :, None] + (beta - run_mean * scale)[None, :, None]
    y = jnp.where(y > 0, y, NEG_SLOPE * y)
    return y[:, :, :, None]


if __name__ == "__main__":
    # Small shapes consistent with the module: BatchNorm2d(64) forces C_out = 64.
    N, C_in, H, W = 2, 4, 16, 18          # W = n_eeg_channels
    C_out = 64

    key = jax.random.PRNGKey(0)
    k1, k2, k3, k4, k5, k6, k7 = jax.random.split(key, 7)

    x = jax.random.normal(k1, (N, C_in, H, W), dtype=jnp.float32)
    w3 = jax.random.normal(k2, (C_out, C_in, 1, W), dtype=jnp.float32) * 0.1
    w4 = jax.random.normal(k3, (C_out, C_out, K_TAPS, 1), dtype=jnp.float32) * 0.05
    gamma = 1.0 + 0.1 * jax.random.normal(k4, (C_out,), dtype=jnp.float32)
    beta = 0.1 * jax.random.normal(k5, (C_out,), dtype=jnp.float32)
    run_mean = 0.1 * jax.random.normal(k6, (C_out,), dtype=jnp.float32)
    run_var = 0.5 + jnp.abs(jax.random.normal(k7, (C_out,), dtype=jnp.float32))

    out = second_conv_block(x, w3, w4, gamma, beta, run_mean, run_var)
    out = jax.block_until_ready(out)

    ref = _reference(x, w3, w4, gamma, beta, run_mean, run_var)
    assert out.shape == (N, C_out, H, 1), out.shape
    # bf16 matmul operands (f32 accumulation) -> loosened tolerance vs the f32 reference.
    assert jnp.allclose(out, ref, atol=5e-2, rtol=5e-2), (
        "mismatch vs reference, max abs err = %s" % float(jnp.max(jnp.abs(out - ref))))

    # Channels-last fast path (avoids the NCHW transpose round-trip) must agree too.
    out_nhc = jax.block_until_ready(
        second_conv_block(x, w3, w4, gamma, beta, run_mean, run_var, channels_last=True))
    assert jnp.allclose(jnp.transpose(out_nhc, (0, 2, 1))[:, :, :, None], out)

    print("KERNEL_OK")
</pallas_src>

<mosaic_0001>
module attributes {stable_mosaic.version = 11 : i64} {
  func.func @_fused_block_kernel(%arg0: i32, %arg1: memref<32x768xbf16, #tpu.memory_space<vmem>>, %arg2: memref<768x64xbf16, #tpu.memory_space<vmem>>, %arg3: memref<1x64xf32, #tpu.memory_space<vmem>>, %arg4: memref<32x64xf32, #tpu.memory_space<vmem>>) attributes {dimension_semantics = [#tpu.dimension_semantics<parallel>], iteration_bounds = array<i64: 1>, scalar_prefetch = 0 : i64, scratch_operands = 0 : i64, tpu.core_type = #tpu.core_type<tc>, window_params = [{transform_indices = @transform_0, window_bounds = array<i64: 32, 768>}, {pipeline_mode = #tpu.pipeline_mode<synchronous>, transform_indices = @transform_1, window_bounds = array<i64: 768, 64>}, {pipeline_mode = #tpu.pipeline_mode<synchronous>, transform_indices = @transform_2, window_bounds = array<i64: 1, 64>}, {transform_indices = @transform_3, window_bounds = array<i64: 32, 64>}]} {
    %c0 = arith.constant 0 : index
    %c0_0 = arith.constant 0 : index
    %0 = vector.load %arg1[%c0, %c0_0] : memref<32x768xbf16, #tpu.memory_space<vmem>>, vector<32x768xbf16>
    %c0_1 = arith.constant 0 : index
    %c0_2 = arith.constant 0 : index
    %1 = vector.load %arg2[%c0_1, %c0_2] : memref<768x64xbf16, #tpu.memory_space<vmem>>, vector<768x64xbf16>
    %cst = arith.constant dense<0.000000e+00> : vector<32x64xf32>
    %2 = tpu.matmul %0, %1, %cst {dimension_numbers = #tpu.dot_dimension_numbers<[1], [0], [0], [1], [0, 0, 1, 1], [], []>} : vector<32x768xbf16>, vector<768x64xbf16>, vector<32x64xf32> -> vector<32x64xf32>
    %c0_3 = arith.constant 0 : index
    %c0_4 = arith.constant 0 : index
    %3 = vector.load %arg3[%c0_3, %c0_4] : memref<1x64xf32, #tpu.memory_space<vmem>>, vector<1x64xf32>
    %4 = vector.broadcast %3 : vector<1x64xf32> to vector<32x64xf32>
    %5 = arith.addf %2, %4 : vector<32x64xf32>
    %cst_5 = arith.constant 0.000000e+00 : f32
    %6 = vector.broadcast %cst_5 : f32 to vector<32x64xf32>
    %7 = arith.cmpf ogt, %5, %6 : vector<32x64xf32>
    %cst_6 = arith.constant 3.000000e-01 : f32
    %8 = vector.broadcast %cst_6 : f32 to vector<32x64xf32>
    %9 = arith.mulf %8, %5 : vector<32x64xf32>
    %10 = arith.select %7, %5, %9 : vector<32x64xi1>, vector<32x64xf32>
    %c0_7 = arith.constant 0 : index
    %c0_8 = arith.constant 0 : index
    %11 = vector.load %arg4[%c0_7, %c0_8] : memref<32x64xf32, #tpu.memory_space<vmem>>, vector<32x64xf32>
    tpu.vector_store %arg4[%c0_7, %c0_8], %10 {strides = array<i32>} : memref<32x64xf32, #tpu.memory_space<vmem>>, vector<32x64xf32>,
    return
  }
  func.func @transform_0(%arg0: i32) -> (i32, i32) {
    %c0_i32 = arith.constant 0 : i32
    %c0_i32_0 = arith.constant 0 : i32
    return %arg0, %c0_i32 : i32, i32
  }
  func.func @transform_1(%arg0: i32) -> (i32, i32) {
    %c0_i32 = arith.constant 0 : i32
    %c0_i32_0 = arith.constant 0 : i32
    %c0_i32_1 = arith.constant 0 : i32
    return %c0_i32, %c0_i32_0 : i32, i32
  }
  func.func @transform_2(%arg0: i32) -> (i32, i32) {
    %c0_i32 = arith.constant 0 : i32
    %c0_i32_0 = arith.constant 0 : i32
    %c0_i32_1 = arith.constant 0 : i32
    return %c0_i32, %c0_i32_0 : i32, i32
  }
  func.func @transform_3(%arg0: i32) -> (i32, i32) {
    %c0_i32 = arith.constant 0 : i32
    %c0_i32_0 = arith.constant 0 : i32
    return %arg0, %c0_i32 : i32, i32
  }
}

</mosaic_0001>

<bundles_post_ra>
// kernel: second_conv_block.1
= control target key start
LH: loop header
LB: loop body
LE: loop exit
PB: predicated region body
PF: predicated region fallthrough
CT: control target
= control target key end

     0   :  { %s1135_s0 = inlined_call_operand.vmem [shape: bf16[32,768], index: 0, kind: input, shape index: {}]   ;;  %s1136_s1 = inlined_call_operand.vmem [shape: bf16[768,64], index: 1, kind: input, shape index: {}]   ;;  %s1137_s2 = inlined_call_operand.vmem [shape: f32[1,64], index: 2, kind: input, shape index: {}]   ;;  %s1138_s3 = inlined_call_operand.hbm [shape: f32[32,64], index: 3, kind: output, shape index: {}]  }
   0x1   :  { %v823_v0 = vld [vmem:[%s1136_s1 + $0x40] sm:$0xff]   ;;  %v827_v4 = vld [vmem:[%s1136_s1 + $0x48] sm:$0xff]   ;;  %v831_v8 = vld [vmem:[%s1136_s1 + $0x50] sm:$0xff]  }
   0x2   :  { %v824_v1 = vld [vmem:[%s1136_s1 + $0xc0] sm:$0xff]   ;;  %720 = vmatprep.subr.bf16.mxu0 %v823_v0  ;;  %v828_v5 = vld [vmem:[%s1136_s1 + $0xc8] sm:$0xff]   ;;  %v832_v9 = vld [vmem:[%s1136_s1 + $0xd0] sm:$0xff]  }
   0x3   :  { %v825_v2 = vld [vmem:[%s1136_s1] sm:$0xff]   ;;  %748 = vmatprep.subr.bf16.mxu1 %v824_v1  ;;  %v829_v6 = vld [vmem:[%s1136_s1 + $0x8] sm:$0xff]   ;;  %v833_v10 = vld [vmem:[%s1136_s1 + $0x10] sm:$0xff]  }
   0x4   :  { %v826_v3 = vld [vmem:[%s1136_s1 + $0x80] sm:$0xff]   ;;  %721 = vmatpush3.bf16.msra.mxu0 %v825_v2  ;;  %v830_v7 = vld [vmem:[%s1136_s1 + $0x88] sm:$0xff]   ;;  %v834_v11 = vld [vmem:[%s1136_s1 + $0x90] sm:$0xff]  }
   0x5   :  { %749 = vmatpush3.bf16.msra.mxu1 %v826_v3  ;;  %722 = vmatprep.subr.bf16.mxu0 %v827_v4  ;;  %v835_v12 = vld [vmem:[%s1136_s1 + $0x58] sm:$0xff]   ;;  %v839_v16 = vld [vmem:[%s1136_s1 + $0x60] sm:$0xff]   ;;  %v843_v20 = vld [vmem:[%s1136_s1 + $0x68] sm:$0xff]  }
   0x6   :  { %750 = vmatprep.subr.bf16.mxu1 %v828_v5  ;;  %v836_v13 = vld [vmem:[%s1136_s1 + $0xd8] sm:$0xff]   ;;  %v840_v17 = vld [vmem:[%s1136_s1 + $0xe0] sm:$0xff]   ;;  %v844_v21 = vld [vmem:[%s1136_s1 + $0xe8] sm:$0xff]  }
   0x7   :  { %v837_v14 = vld [vmem:[%s1136_s1 + $0x18] sm:$0xff]   ;;  %v841_v18 = vld [vmem:[%s1136_s1 + $0x20] sm:$0xff]   ;;  %v845_v22 = vld [vmem:[%s1136_s1 + $0x28] sm:$0xff]  }
   0x8   :  { %723 = vmatpush3.bf16.msra.mxu0 %v829_v6  ;;  %v838_v15 = vld [vmem:[%s1136_s1 + $0x98] sm:$0xff]   ;;  %v842_v19 = vld [vmem:[%s1136_s1 + $0xa0] sm:$0xff]   ;;  %v846_v23 = vld [vmem:[%s1136_s1 + $0xa8] sm:$0xff]  }
   0x9   :  { %751 = vmatpush3.bf16.msra.mxu1 %v830_v7  ;;  %724 = vmatprep.subr.bf16.mxu0 %v831_v8  ;;  %v847_v24 = vld [vmem:[%s1136_s1 + $0x70] sm:$0xff]   ;;  %v851_v28 = vld [vmem:[%s1136_s1 + $0x78] sm:$0xff]   ;;  %v858_v34 = vld [vmem:[%s1135_s0 + $0x8] ss:$24 sps:$4 sm:$0xff]  }
   0xa   :  { %752 = vmatprep.subr.bf16.mxu1 %v832_v9  ;;  %v848_v25 = vld [vmem:[%s1136_s1 + $0xf0] sm:$0xff]   ;;  %v852_v29 = vld [vmem:[%s1136_s1 + $0xf8] sm:$0xff]   ;;  %v860_v35 = vld [vmem:[%s1135_s0 + $0xc] ss:$24 sps:$4 sm:$0xff]  }
   0xb   :  { %v849_v26 = vld [vmem:[%s1136_s1 + $0x30] sm:$0xff]   ;;  %v853_v30 = vld [vmem:[%s1136_s1 + $0x38] sm:$0xff]   ;;  %v861_v36 = vld [vmem:[%s1136_s1 + $0x140] sm:$0xff]   ;;  %560 = vmatprep.mubr.bf16.mxu1 %v860_v35 }
   0xc   :  { %725 = vmatpush3.bf16.msra.mxu0 %v833_v10  ;;  %v850_v27 = vld [vmem:[%s1136_s1 + $0xb0] sm:$0xff]   ;;  %v854_v31 = vld [vmem:[%s1136_s1 + $0xb8] sm:$0xff]   ;;  %v862_v37 = vld [vmem:[%s1136_s1 + $0x100] sm:$0xff]  }
   0xd   :  { %753 = vmatpush3.bf16.msra.mxu1 %v834_v11  ;;  %726 = vmatprep.subr.bf16.mxu0 %v835_v12  ;;  %v855_v32 = vld [vmem:[%s1135_s0] ss:$24 sps:$4 sm:$0xff]   ;;  %v857_v33 = vld [vmem:[%s1135_s0 + $0x4] ss:$24 sps:$4 sm:$0xff]   ;;  %v863_v38 = vld [vmem:[%s1136_s1 + $0x148] sm:$0xff]  }
   0xe   :  { %754 = vmatprep.subr.bf16.mxu1 %v836_v13  ;;  %511 = vmatprep.mubr.bf16.mxu0 %v857_v33  ;;  %v864_v39 = vld [vmem:[%s1136_s1 + $0x108] sm:$0xff]   ;;  %v865_v40 = vld [vmem:[%s1136_s1 + $0x150] sm:$0xff]   ;;  %v867_v42 = vld [vmem:[%s1136_s1 + $0x158] sm:$0xff]  }
   0xf   :  { %v866_v41 = vld [vmem:[%s1136_s1 + $0x110] sm:$0xff]   ;;  %v868_v43 = vld [vmem:[%s1136_s1 + $0x118] sm:$0xff]   ;;  %v869_v47 = vld [vmem:[%s1136_s1 + $0x160] sm:$0xff]  }
  0x10   :  { %727 = vmatpush3.bf16.msra.mxu0 %v837_v14  ;;  %v871_v44 = vld [vmem:[%s1135_s0 + $0x34] ss:$24 sps:$4 sm:$0xff]   ;;  %v873_v45 = vld [vmem:[%s1135_s0 + $0x30] ss:$24 sps:$4 sm:$0xff]   ;;  %v870_v49 = vld [vmem:[%s1136_s1 + $0x120] sm:$0xff]  }
  0x11   :  { %755 = vmatpush3.bf16.msra.mxu1 %v838_v15  ;;  %728 = vmatprep.subr.bf16.mxu0 %v839_v16  ;;  %v874_v46 = vld [vmem:[%s1135_s0 + $0x3c] ss:$24 sps:$4 sm:$0xff]   ;;  %v877_v48 = vld [vmem:[%s1135_s0 + $0x38] ss:$24 sps:$4 sm:$0xff]   ;;  %v876_v50 = vld [vmem:[%s1136_s1 + $0x168] sm:$0xff]  }
  0x12   :  { %756 = vmatprep.subr.bf16.mxu1 %v840_v17  ;;  %v878_v51 = vld [vmem:[%s1136_s1 + $0x128] sm:$0xff]   ;;  %v879_v53 = vld [vmem:[%s1136_s1 + $0x170] sm:$0xff]   ;;  %v888_v54 = vld [vmem:[%s1135_s0 + $0x44] ss:$24 sps:$4 sm:$0xff]  }
  0x13   :  { %v885_v52 = vld [vmem:[%s1135_s0 + $0x14] ss:$24 sps:$4 sm:$0xff]  }
  0x14   :  { %729 = vmatpush3.bf16.msra.mxu0 %v841_v18 }
  0x15   :  { %757 = vmatpush3.bf16.msra.mxu1 %v842_v19  ;;  %730 = vmatprep.subr.bf16.mxu0 %v843_v20 }
  0x16   :  { %758 = vmatprep.subr.bf16.mxu1 %v844_v21 }
  0x18   :  { %731 = vmatpush3.bf16.msra.mxu0 %v845_v22 }
  0x19   :  { %759 = vmatpush3.bf16.msra.mxu1 %v846_v23  ;;  %732 = vmatprep.subr.bf16.mxu0 %v847_v24 }
  0x1a   :  { %760 = vmatprep.subr.bf16.mxu1 %v848_v25 }
  0x1c   :  { %733 = vmatpush3.bf16.msra.mxu0 %v849_v26 }
  0x1d   :  { %761 = vmatpush3.bf16.msra.mxu1 %v850_v27  ;;  %734 = vmatprep.subr.bf16.mxu0 %v851_v28 }
  0x1e   :  { %762 = vmatprep.subr.bf16.mxu1 %v852_v29 }
  0x20   :  { %735 = vmatpush3.bf16.msra.mxu0 %v853_v30 }
  0x21   :  { %763 = vmatpush3.bf16.msra.mxu1 %v854_v31  ;;  %776 = vmatprep.subr.bf16.mxu0 %v861_v36 }
  0x22   :  { %804 = vmatprep.subr.bf16.mxu1 %v861_v36 }
  0x23   :  { %512 = vmatmul.mubr.bf16.vlgmr.msra.gmra.mrb[0].mxu0 %v855_v32 }
  0x24   :  { %561 = vmatmul.mubr.bf16.vlgmr.msra.gmra.mrb[0].mxu1 %v858_v34  ;;  %777 = vmatpush3.bf16.msra.mxu0 %v862_v37 }
  0x25   :  { %812 = vmatpush3.bf16.msra.mxu1 %v862_v37  ;;  %778 = vmatprep.subr.bf16.mxu0 %v863_v38 }
  0x26   :  { %805 = vmatprep.subr.bf16.mxu1 %v863_v38  ;;  %519 = vmatprep.mubr.bf16.mxu0 %v871_v44 }
  0x27   :  { %568 = vmatprep.mubr.bf16.mxu1 %v874_v46 }
  0x28   :  { %779 = vmatpush3.bf16.msra.mxu0 %v864_v39 }
  0x29   :  { %813 = vmatpush3.bf16.msra.mxu1 %v864_v39  ;;  %780 = vmatprep.subr.bf16.mxu0 %v865_v40 }
  0x2a   :  { %806 = vmatprep.subr.bf16.mxu1 %v865_v40 }
  0x2b   :  { %520 = vmatmul.mubr.bf16.gmra.mrb[4].mxu0 %v873_v45 }
  0x2c   :  { %781 = vmatpush3.bf16.msra.mxu0 %v866_v41  ;;  %569 = vmatmul.mubr.bf16.gmra.mrb[4].mxu1 %v877_v48 }
  0x2d   :  { %814 = vmatpush3.bf16.msra.mxu1 %v866_v41  ;;  %782 = vmatprep.subr.bf16.mxu0 %v867_v42 }
  0x2e   :  { %807 = vmatprep.subr.bf16.mxu1 %v867_v42  ;;  %609 = vmatprep.mubr.bf16.mxu0 %v885_v52 }
  0x30   :  { %783 = vmatpush3.bf16.msra.mxu0 %v868_v43 }
  0x31   :  { %815 = vmatpush3.bf16.msra.mxu1 %v868_v43  ;;  %784 = vmatprep.subr.bf16.mxu0 %v869_v47 }
  0x32   :  { %808 = vmatprep.subr.bf16.mxu1 %v869_v47 }
  0x34   :  { %785 = vmatpush3.bf16.msra.mxu0 %v870_v49 }
  0x35   :  { %816 = vmatpush3.bf16.msra.mxu1 %v870_v49  ;;  %786 = vmatprep.subr.bf16.mxu0 %v876_v50 }
  0x36   :  { %809 = vmatprep.subr.bf16.mxu1 %v876_v50 }
  0x37   :  { %8 = vsyncpa [#allocation3], 0  ;;  %617 = vmatprep.mubr.bf16.mxu1 %v888_v54  ;;  %v880_v55 = vld [vmem:[%s1136_s1 + $0x130] sm:$0xff]   ;;  %v881_v56 = vld [vmem:[%s1136_s1 + $0x178] sm:$0xff]   ;;  %vm638_vm1 = vcmask 523264  }
  0x38   :  { %787 = vmatpush3.bf16.msra.mxu0 %v878_v51  ;;  %v882_v57 = vld [vmem:[%s1136_s1 + $0x138] sm:$0xff]   ;;  %v883_v58 = vld [vmem:[%s1135_s0 + $0x10] ss:$24 sps:$4 sm:$0xff]   ;;  %v659_v62 = vld [vmem:[%s1137_s2] ss:$0 sm:$0xff] }
  0x39   :  { %817 = vmatpush3.bf16.msra.mxu1 %v878_v51  ;;  %788 = vmatprep.subr.bf16.mxu0 %v879_v53  ;;  %v886_v59 = vld [vmem:[%s1135_s0 + $0x40] ss:$24 sps:$4 sm:$0xff]   ;;  %s913_s0 = smov [#allocation2]  }
  0x3a   :  { %810 = vmatprep.subr.bf16.mxu1 %v879_v53  ;;  %s648_s1 = sshll.u32 %s913_s0, 4  ;;  %s649_s1 = int_to_ptr.vmem [resolvable:$true] %s648_s1 }
  0x3b   :  { %s889_s2 = scalar_lea.vmem %s649_s1, 512  ;;  %p894_p1 = scmp.lt.s32.totalorder %s649_s1, %s649_s1 }
  0x3c   :  { %789 = vmatpush3.bf16.msra.mxu0 %v880_v55  ;;  %p890_p0 = scmp.ne.s32.totalorder %s649_s1, %s889_s2  ;;  %p895_p2 = scmp.lt.s32.totalorder %s889_s2, %s889_s2 }
  0x3d   :  { %818 = vmatpush3.bf16.msra.mxu1 %v880_v55  ;;  %790 = vmatprep.subr.bf16.mxu0 %v881_v56 }
  0x3e   :  { %811 = vmatprep.subr.bf16.mxu1 %v881_v56  ;;  %p896_p3 = por %p895_p2, %p894_p1 }
  0x40   :  { %791 = vmatpush3.bf16.msra.mxu0 %v882_v57  ;;  %p897_p4 = pnand %p896_p3, %p890_p0 }
  0x41   :  { %819 = vmatpush3.bf16.msra.mxu1 %v882_v57 }
  0x43   :  { %610 = vmatmul.mubr.bf16.vlgmr.msra.gmra.mrb[8].mxu0 %v883_v58 }
  0x44   :  { %618 = vmatmul.mubr.bf16.vlgmr.msra.gmra.mrb[8].mxu1 %v886_v59 }
  0xf6   :  { %v736_v60 = vpop.f32.mrb[0].mxu0 }
  0xf7   :  { %v764_v61 = vpop.f32.mrb[0].mxu1  ;;  %v737_v63 = vpop.f32.mrb[1].mxu0 }
  0xf8   :  { %v738_v0 = vadd.f32 %v737_v63, %v736_v60  ;;  %v765_v1 = vpop.f32.mrb[1].mxu1  ;;  %v739_v2 = vpop.f32.mrb[2].mxu0 }
  0xf9   :  { %v766_v3 = vadd.f32 %v765_v1, %v764_v61  ;;  %v767_v4 = vpop.f32.mrb[2].mxu1  ;;  %v740_v5 = vpop.f32.mrb[3].mxu0 }
  0xfa   :  { %v514_v6 = vadd.f32 %v738_v0, %v659_v62  ;;  %v741_v7 = vadd.f32 %v740_v5, %v739_v2  ;;  %v768_v8 = vpop.f32.mrb[3].mxu1 }
  0xfb   :  { %v769_v9 = vadd.f32 %v768_v8, %v767_v4 }
  0xfc   :  { %v563_v10 = vadd.f32 %v766_v3, %v514_v6  ;;  %v517_v11 = vadd.f32 %v741_v7, %v659_v62 }
  0xfe   :  { %v566_v12 = vadd.f32 %v769_v9, %v517_v11  ;;  %v742_v13 = vpop.f32.mrb[4].mxu0 }
  0xff   :  { %v743_v14 = vpop.f32.mrb[5].mxu0  ;;  %v770_v15 = vpop.f32.mrb[4].mxu1 }
 0x100   :  { %v744_v16 = vadd.f32 %v743_v14, %v742_v13  ;;  %v745_v17 = vpop.f32.mrb[6].mxu0  ;;  %v771_v18 = vpop.f32.mrb[5].mxu1 }
 0x101   :  { %v746_v19 = vpop.f32.mrb[7].mxu0  ;;  %v772_v20 = vadd.f32 %v771_v18, %v770_v15  ;;  %v773_v21 = vpop.f32.mrb[6].mxu1 }
 0x102   :  { %v522_v22 = vadd.f32 %v744_v16, %v659_v62  ;;  %v747_v23 = vadd.f32 %v746_v19, %v745_v17  ;;  %v774_v24 = vpop.f32.mrb[7].mxu1 }
 0x103   :  { %v775_v25 = vadd.f32 %v774_v24, %v773_v21 }
 0x104   :  { %v525_v26 = vadd.f32 %v747_v23, %v659_v62  ;;  %v571_v27 = vadd.f32 %v772_v20, %v522_v22 }
 0x106   :  { %v574_v28 = vadd.f32 %v775_v25, %v525_v26 }
 0x116   :  { %v792_v29 = vpop.f32.mrb[8].mxu0 }
 0x117   :  { %v798_v30 = vpop.f32.mrb[8].mxu1  ;;  %v793_v31 = vpop.f32.mrb[9].mxu0 }
 0x118   :  { %v794_v32 = vadd.f32 %v793_v31, %v792_v29  ;;  %v799_v33 = vpop.f32.mrb[9].mxu1  ;;  %v795_v34 = vpop.f32.mrb[10].mxu0 }
 0x119   :  { %v800_v35 = vadd.f32 %v799_v33, %v798_v30  ;;  %v801_v36 = vpop.f32.mrb[10].mxu1  ;;  %v796_v37 = vpop.f32.mrb[11].mxu0 }
 0x11a   :  { %v612_v38 = vadd.f32 %v794_v32, %v563_v10  ;;  %v797_v39 = vadd.f32 %v796_v37, %v795_v34  ;;  %v802_v40 = vpop.f32.mrb[11].mxu1 }
 0x11b   :  { %v620_v41 = vadd.f32 %v800_v35, %v571_v27  ;;  %v803_v42 = vadd.f32 %v802_v40, %v801_v36 }
 0x11c   :  { %vm626_vm0 = vcmp.gt.f32.partialorder %v612_v38, 0.0  ;;  %v630_v43 = vmul.f32 0.3, %v612_v38  ;;  %v615_v44 = vadd.f32 %v797_v39, %v566_v12 }
 0x11d   :  { %vm628_vm2 = vcmp.gt.f32.partialorder %v620_v41, 0.0  ;;  %v632_v45 = vmul.f32 0.3, %v620_v41  ;;  %v623_v46 = vadd.f32 %v803_v42, %v574_v28 }
 0x11e   :  { %v634_v47 = vsel %vm626_vm0, %v612_v38, %v630_v43  ;;  %vm627_vm3 = vcmp.gt.f32.partialorder %v615_v44, 0.0  ;;  %v631_v48 = vmul.f32 0.3, %v615_v44 }
 0x11f   :  { %639 = vst.msk [vmem:[#allocation2] sm:$0xff] %vm638_vm1, %v634_v47  ;;  %v636_v49 = vsel %vm628_vm2, %v620_v41, %v632_v45  ;;  %vm629_vm4 = vcmp.gt.f32.partialorder %v623_v46, 0.0  ;;  %v633_v50 = vmul.f32 0.3, %v623_v46 }
 0x120   :  { %641 = vst.msk [vmem:[#allocation2 + $0x10] sm:$0xff] %vm638_vm1, %v636_v49  ;;  %v635_v51 = vsel %vm627_vm3, %v615_v44, %v631_v48 }
 0x121   :  { %640 = vst.msk [vmem:[#allocation2 + $0x8] sm:$0xff] %vm638_vm1, %v635_v51  ;;  %v637_v52 = vsel %vm629_vm4, %v623_v46, %v633_v50 }
 0x122   :  { %642 = vst.msk [vmem:[#allocation2 + $0x18] sm:$0xff] %vm638_vm1, %v637_v52 }
 0x123   :  { %900 = shalt.err (!%p897_p4)
}
 0x124   :  { %s901_s28 = scalar_lea.hbm %s1138_s3, 512 }
 0x125   :  { %p902_p5 = scmp.ne.s32.totalorder %s1138_s3, %s901_s28  ;;  %p905_p6 = scmp.lt.u32.totalorder %s901_s28, %s1138_s3 }
 0x127   :  { %p907_p7 = pnand %p905_p6, %p902_p5 }
 0x129   :  { %910 = shalt.err (!%p907_p7)
}
 0x12a   :  { %s914_s6 = smov 128   ;;  %s915_s7 = smov 8  }
 0x12b   :  { %654 = dma.vmem_to_hbm [thread:$0]  %s649_s1, 512, %s1138_s3, [#allocation3], %s914_s6, %s914_s6, %s915_s7  }
 0x12c   :  { %911 = dma.done.wait [#allocation3], 512  }
 0x12d   :  { %912 = vsyncadd [#allocation3], 4294966784 }
 0x12e   :  { %658 = vsyncpa [#allocation3], 1 }

</bundles_post_ra>
